<compile_context>
chip_gen: v7x
topology: tpu7x:2x2x1
jax: 0.10.0
libtpu: 0.0.40
codegen_flags: <defaults>
</compile_context>

<pallas_src>
import jax
import jax.numpy as jnp
from jax.experimental import pallas as pl
from jax.experimental.pallas import tpu as pltpu

_BN_EPS = 1e-5
_LANE = 128      # lane width: pad feature dims to multiples of this
_SUBLANE = 8     # sublane width: pad batch dim to multiples of this


def _round_up(v, m):
    return ((v + m - 1) // m) * m


def _pad2(a, rows, cols, fill=0.0):
    """Pad a 2-D array to (rows, cols) with `fill`."""
    out = jnp.full((rows, cols), fill, a.dtype)
    return out.at[: a.shape[0], : a.shape[1]].set(a)


def _full_vmem_spec(shape):
    """Whole-array VMEM block (grid-less pallas_call)."""
    return pl.BlockSpec(shape, lambda: tuple(0 for _ in shape))


# ---------------------------------------------------------------------------
# Fused MLP kernel
# ---------------------------------------------------------------------------
def _make_fused_mlp_kernel(num_layers, n_real, n_pad):
    """Build a fused kernel for `num_layers` layers.

    Ref order: (x_ref, [w, b, gamma, beta] * (num_layers-1), w_out, b_out, o_ref).
    Feature dims are zero-padded outside the kernel (padded columns stay exactly
    0 through Linear+BN+ReLU, so they never contaminate real features).  Padded
    batch rows are excluded from BN statistics via a compile-time row mask.
    """
    need_mask = n_pad != n_real
    inv_n = 1.0 / float(n_real)

    def kernel(x_ref, *refs):
        o_ref = refs[-1]
        params = refs[:-1]

        h = x_ref[...].astype(jnp.float32)

        if need_mask:
            row_ids = jax.lax.broadcasted_iota(jnp.int32, (n_pad, 1), 0)
            row_mask = (row_ids < n_real).astype(jnp.float32)

        idx = 0
        for _ in range(num_layers - 1):
            w = params[idx][...]
            b = params[idx + 1][...]
            g = params[idx + 2][...]
            beta = params[idx + 3][...]
            idx += 4

            # Linear (MXU, f32 accumulation)
            h = jnp.dot(h, w, preferred_element_type=jnp.float32) + b

            # BatchNorm1d, training-mode batch stats (biased var), single pass.
            hm = h * row_mask if need_mask else h
            mean = jnp.sum(hm, axis=0, keepdims=True) * inv_n
            ex2 = jnp.sum(hm * h, axis=0, keepdims=True) * inv_n
            var = jnp.maximum(ex2 - mean * mean, 0.0)

            # Fold gamma into the rsqrt scale: h*scale + shift (1 mul + 1 add).
            scale = g * jax.lax.rsqrt(var + _BN_EPS)        # (1, D) row vector
            shift = beta - mean * scale                     # (1, D) row vector
            h = h * scale + shift

            # ReLU
            h = jnp.maximum(h, 0.0)

        # Final Linear
        w = params[idx][...]
        b = params[idx + 1][...]
        out = jnp.dot(h, w, preferred_element_type=jnp.float32) + b
        o_ref[...] = out.astype(o_ref.dtype)

    return kernel


# ---------------------------------------------------------------------------
# Parameter init mirroring torch.nn.Linear: U(-1/sqrt(fan_in), +1/sqrt(fan_in))
# ---------------------------------------------------------------------------
def _init_linear(key, in_dim, out_dim, dtype=jnp.float32):
    kw, kb = jax.random.split(key)
    bound = 1.0 / (in_dim ** 0.5)
    # stored as (in_dim, out_dim) so the kernel computes x @ W + b directly
    w = jax.random.uniform(kw, (in_dim, out_dim), dtype, -bound, bound)
    b = jax.random.uniform(kb, (1, out_dim), dtype, -bound, bound)
    return w, b


class PallasMLP:
    def __init__(self, num_layers, input_dim, hidden_dim, output_dim, key):
        if num_layers < 1:
            raise ValueError("number of layers should be positive!")
        self.num_layers = num_layers
        self.linear_or_not = num_layers == 1
        self.input_dim = input_dim
        self.hidden_dim = hidden_dim
        self.output_dim = output_dim

        # --- un-padded parameters (source of truth + used by the pure-JAX ref) ---
        self.params = []
        if self.linear_or_not:
            key, sub = jax.random.split(key)
            self.params.append(_init_linear(sub, input_dim, output_dim))
            dims = [input_dim, output_dim]
        else:
            dims = [input_dim] + [hidden_dim] * (num_layers - 1) + [output_dim]
            for layer in range(num_layers):
                key, sub = jax.random.split(key)
                self.params.append(_init_linear(sub, dims[layer], dims[layer + 1]))
            # BatchNorm1d affine params at torch init: gamma=1, beta=0
            self.bn_params = [
                (jnp.ones((1, hidden_dim), jnp.float32),
                 jnp.zeros((1, hidden_dim), jnp.float32))
                for _ in range(num_layers - 1)
            ]

        # --- lane-dense (128-aligned) padded parameter slabs, built ONCE ---
        self._dims_p = [_round_up(d, _LANE) for d in dims]
        flat = []
        for layer in range(num_layers):
            w, b = self.params[layer]
            flat.append(_pad2(w, self._dims_p[layer], self._dims_p[layer + 1]))
            flat.append(_pad2(b, 1, self._dims_p[layer + 1]))
            if layer < num_layers - 1:
                g, beta = self.bn_params[layer]
                flat.append(_pad2(g, 1, self._dims_p[layer + 1], fill=1.0))
                flat.append(_pad2(beta, 1, self._dims_p[layer + 1]))
        self._flat_padded = flat

    def __call__(self, x):
        orig_shape = x.shape
        if x.ndim > 2:
            # Torch's transpose dance + BatchNorm1d on 3-D input normalizes each
            # feature over all leading positions -> equivalent to flattening.
            x = x.reshape(-1, orig_shape[-1])

        n, din = x.shape
        assert din == self.input_dim
        n_pad = _round_up(max(n, _SUBLANE), _SUBLANE)
        din_pad = self._dims_p[0]
        dout_pad = self._dims_p[-1]

        xp = jnp.zeros((n_pad, din_pad), jnp.float32)
        xp = xp.at[:n, :din].set(x.astype(jnp.float32))

        kernel = _make_fused_mlp_kernel(self.num_layers, n, n_pad)

        in_specs = [_full_vmem_spec(tuple(xp.shape))]
        in_specs += [_full_vmem_spec(tuple(p.shape)) for p in self._flat_padded]

        flops = sum(2 * n_pad * self._dims_p[i] * self._dims_p[i + 1]
                    for i in range(self.num_layers))
        transcendentals = ((self.num_layers - 1) * self._dims_p[1]
                           if self.num_layers > 1 else 0)
        bytes_accessed = 4 * (int(xp.size)
                              + sum(int(p.size) for p in self._flat_padded)
                              + n_pad * dout_pad)

        out = pl.pallas_call(
            kernel,
            out_shape=jax.ShapeDtypeStruct((n_pad, dout_pad), jnp.float32),
            in_specs=in_specs,
            out_specs=_full_vmem_spec((n_pad, dout_pad)),
            compiler_params=pltpu.CompilerParams(
                vmem_limit_bytes=64 * 1024 * 1024),
            cost_estimate=pl.CostEstimate(
                flops=flops,
                transcendentals=transcendentals,
                bytes_accessed=bytes_accessed),
        )(xp, *self._flat_padded)

        out = out[:n, : self.output_dim]
        if len(orig_shape) > 2:
            out = out.reshape(orig_shape[:-1] + (self.output_dim,))
        return out


# ---------------------------------------------------------------------------
# Pure-JAX reference (matches the torch module in training mode)
# ---------------------------------------------------------------------------
def _ref_forward(mlp, x):
    orig_shape = x.shape
    if x.ndim > 2:
        x = x.reshape(-1, orig_shape[-1])
    if mlp.linear_or_not:
        w, b = mlp.params[0]
        out = x @ w + b
    else:
        h = x
        for layer in range(mlp.num_layers - 1):
            w, b = mlp.params[layer]
            gamma, beta = mlp.bn_params[layer]
            h = h @ w + b
            mean = jnp.mean(h, axis=0, keepdims=True)
            var = jnp.mean((h - mean) ** 2, axis=0, keepdims=True)
            h = (h - mean) / jnp.sqrt(var + _BN_EPS) * gamma + beta
            h = jnp.maximum(h, 0.0)
        w, b = mlp.params[-1]
        out = h @ w + b
    if len(orig_shape) > 2:
        out = out.reshape(orig_shape[:-1] + (out.shape[-1],))
    return out


if __name__ == "__main__":
    key = jax.random.PRNGKey(0)
    key, kx, kp, kx2, kx3 = jax.random.split(key, 5)

    num_layers, input_dim, hidden_dim, output_dim = 3, 16, 32, 8
    batch = 8

    mlp = PallasMLP(num_layers, input_dim, hidden_dim, output_dim, kp)

    # main path: multi-layer MLP, batch already sublane-aligned
    x = jax.random.normal(kx, (batch, input_dim), jnp.float32)
    out = jax.block_until_ready(mlp(x))
    ref = _ref_forward(mlp, x)
    assert out.shape == (batch, output_dim), out.shape
    assert jnp.allclose(out, ref, atol=1e-4, rtol=1e-4), "mismatch vs reference"

    # batch not a multiple of 8 -> exercises the BN row-mask path
    x2 = jax.random.normal(kx2, (10, input_dim), jnp.float32)
    out2 = jax.block_until_ready(mlp(x2))
    assert jnp.allclose(out2, _ref_forward(mlp, x2), atol=1e-4, rtol=1e-4)

    # 3-D input path (flattened leading dims)
    x3 = jax.random.normal(kx3, (2, 5, input_dim), jnp.float32)
    out3 = jax.block_until_ready(mlp(x3))
    assert out3.shape == (2, 5, output_dim)
    assert jnp.allclose(out3, _ref_forward(mlp, x3), atol=1e-4, rtol=1e-4)

    # single-layer (pure linear) path
    mlp1 = PallasMLP(1, input_dim, hidden_dim, output_dim, kp)
    out1 = jax.block_until_ready(mlp1(x))
    assert jnp.allclose(out1, _ref_forward(mlp1, x), atol=1e-4, rtol=1e-4)

    print("KERNEL_OK")
</pallas_src>

<mosaic_0001>
module attributes {stable_mosaic.version = 11 : i64} {
  func.func @kernel(%arg0: memref<8x128xf32, #tpu.memory_space<vmem>>, %arg1: memref<128x128xf32, #tpu.memory_space<vmem>>, %arg2: memref<1x128xf32, #tpu.memory_space<vmem>>, %arg3: memref<1x128xf32, #tpu.memory_space<vmem>>, %arg4: memref<1x128xf32, #tpu.memory_space<vmem>>, %arg5: memref<128x128xf32, #tpu.memory_space<vmem>>, %arg6: memref<1x128xf32, #tpu.memory_space<vmem>>, %arg7: memref<1x128xf32, #tpu.memory_space<vmem>>, %arg8: memref<1x128xf32, #tpu.memory_space<vmem>>, %arg9: memref<128x128xf32, #tpu.memory_space<vmem>>, %arg10: memref<1x128xf32, #tpu.memory_space<vmem>>, %arg11: memref<8x128xf32, #tpu.memory_space<vmem>>) attributes {dimension_semantics = [], scalar_prefetch = 0 : i64, scratch_operands = 0 : i64, tpu.core_type = #tpu.core_type<tc>} {
    %c0 = arith.constant 0 : index
    %c0_0 = arith.constant 0 : index
    %0 = vector.load %arg0[%c0, %c0_0] : memref<8x128xf32, #tpu.memory_space<vmem>>, vector<8x128xf32>
    %c0_1 = arith.constant 0 : index
    %c0_2 = arith.constant 0 : index
    %1 = vector.load %arg1[%c0_1, %c0_2] : memref<128x128xf32, #tpu.memory_space<vmem>>, vector<128x128xf32>
    %c0_3 = arith.constant 0 : index
    %c0_4 = arith.constant 0 : index
    %2 = vector.load %arg2[%c0_3, %c0_4] : memref<1x128xf32, #tpu.memory_space<vmem>>, vector<1x128xf32>
    %c0_5 = arith.constant 0 : index
    %c0_6 = arith.constant 0 : index
    %3 = vector.load %arg3[%c0_5, %c0_6] : memref<1x128xf32, #tpu.memory_space<vmem>>, vector<1x128xf32>
    %c0_7 = arith.constant 0 : index
    %c0_8 = arith.constant 0 : index
    %4 = vector.load %arg4[%c0_7, %c0_8] : memref<1x128xf32, #tpu.memory_space<vmem>>, vector<1x128xf32>
    %cst = arith.constant dense<0.000000e+00> : vector<8x128xf32>
    %5 = tpu.matmul %0, %1, %cst {dimension_numbers = #tpu.dot_dimension_numbers<[1], [0], [0], [1], [0, 0, 1, 1], [], []>} : vector<8x128xf32>, vector<128x128xf32>, vector<8x128xf32> -> vector<8x128xf32>
    %6 = vector.broadcast %2 : vector<1x128xf32> to vector<8x128xf32>
    %7 = arith.addf %5, %6 : vector<8x128xf32>
    %cst_9 = arith.constant dense<0.000000e+00> : vector<128xf32>
    %8 = vector.multi_reduction <add>, %7, %cst_9 [0] : vector<8x128xf32> to vector<128xf32>
    %9 = vector.shape_cast %8 : vector<128xf32> to vector<1x128xf32>
    %cst_10 = arith.constant 1.250000e-01 : f32
    %10 = vector.broadcast %cst_10 : f32 to vector<1x128xf32>
    %11 = arith.mulf %9, %10 : vector<1x128xf32>
    %12 = arith.mulf %7, %7 : vector<8x128xf32>
    %cst_11 = arith.constant dense<0.000000e+00> : vector<128xf32>
    %13 = vector.multi_reduction <add>, %12, %cst_11 [0] : vector<8x128xf32> to vector<128xf32>
    %14 = vector.shape_cast %13 : vector<128xf32> to vector<1x128xf32>
    %cst_12 = arith.constant 1.250000e-01 : f32
    %15 = vector.broadcast %cst_12 : f32 to vector<1x128xf32>
    %16 = arith.mulf %14, %15 : vector<1x128xf32>
    %17 = arith.mulf %11, %11 : vector<1x128xf32>
    %18 = arith.subf %16, %17 : vector<1x128xf32>
    %cst_13 = arith.constant 0.000000e+00 : f32
    %19 = vector.broadcast %cst_13 : f32 to vector<1x128xf32>
    %20 = arith.maximumf %18, %19 : vector<1x128xf32>
    %cst_14 = arith.constant 9.99999974E-6 : f32
    %21 = vector.broadcast %cst_14 : f32 to vector<1x128xf32>
    %22 = arith.addf %20, %21 : vector<1x128xf32>
    %23 = math.rsqrt %22 : vector<1x128xf32>
    %24 = arith.mulf %3, %23 : vector<1x128xf32>
    %25 = arith.mulf %11, %24 : vector<1x128xf32>
    %26 = arith.subf %4, %25 : vector<1x128xf32>
    %27 = vector.broadcast %24 : vector<1x128xf32> to vector<8x128xf32>
    %28 = arith.mulf %7, %27 : vector<8x128xf32>
    %29 = vector.broadcast %26 : vector<1x128xf32> to vector<8x128xf32>
    %30 = arith.addf %28, %29 : vector<8x128xf32>
    %cst_15 = arith.constant 0.000000e+00 : f32
    %31 = vector.broadcast %cst_15 : f32 to vector<8x128xf32>
    %32 = arith.maximumf %30, %31 : vector<8x128xf32>
    %c0_16 = arith.constant 0 : index
    %c0_17 = arith.constant 0 : index
    %33 = vector.load %arg5[%c0_16, %c0_17] : memref<128x128xf32, #tpu.memory_space<vmem>>, vector<128x128xf32>
    %c0_18 = arith.constant 0 : index
    %c0_19 = arith.constant 0 : index
    %34 = vector.load %arg6[%c0_18, %c0_19] : memref<1x128xf32, #tpu.memory_space<vmem>>, vector<1x128xf32>
    %c0_20 = arith.constant 0 : index
    %c0_21 = arith.constant 0 : index
    %35 = vector.load %arg7[%c0_20, %c0_21] : memref<1x128xf32, #tpu.memory_space<vmem>>, vector<1x128xf32>
    %c0_22 = arith.constant 0 : index
    %c0_23 = arith.constant 0 : index
    %36 = vector.load %arg8[%c0_22, %c0_23] : memref<1x128xf32, #tpu.memory_space<vmem>>, vector<1x128xf32>
    %cst_24 = arith.constant dense<0.000000e+00> : vector<8x128xf32>
    %37 = tpu.matmul %32, %33, %cst_24 {dimension_numbers = #tpu.dot_dimension_numbers<[1], [0], [0], [1], [0, 0, 1, 1], [], []>} : vector<8x128xf32>, vector<128x128xf32>, vector<8x128xf32> -> vector<8x128xf32>
    %38 = vector.broadcast %34 : vector<1x128xf32> to vector<8x128xf32>
    %39 = arith.addf %37, %38 : vector<8x128xf32>
    %cst_25 = arith.constant dense<0.000000e+00> : vector<128xf32>
    %40 = vector.multi_reduction <add>, %39, %cst_25 [0] : vector<8x128xf32> to vector<128xf32>
    %41 = vector.shape_cast %40 : vector<128xf32> to vector<1x128xf32>
    %cst_26 = arith.constant 1.250000e-01 : f32
    %42 = vector.broadcast %cst_26 : f32 to vector<1x128xf32>
    %43 = arith.mulf %41, %42 : vector<1x128xf32>
    %44 = arith.mulf %39, %39 : vector<8x128xf32>
    %cst_27 = arith.constant dense<0.000000e+00> : vector<128xf32>
    %45 = vector.multi_reduction <add>, %44, %cst_27 [0] : vector<8x128xf32> to vector<128xf32>
    %46 = vector.shape_cast %45 : vector<128xf32> to vector<1x128xf32>
    %cst_28 = arith.constant 1.250000e-01 : f32
    %47 = vector.broadcast %cst_28 : f32 to vector<1x128xf32>
    %48 = arith.mulf %46, %47 : vector<1x128xf32>
    %49 = arith.mulf %43, %43 : vector<1x128xf32>
    %50 = arith.subf %48, %49 : vector<1x128xf32>
    %cst_29 = arith.constant 0.000000e+00 : f32
    %51 = vector.broadcast %cst_29 : f32 to vector<1x128xf32>
    %52 = arith.maximumf %50, %51 : vector<1x128xf32>
    %cst_30 = arith.constant 9.99999974E-6 : f32
    %53 = vector.broadcast %cst_30 : f32 to vector<1x128xf32>
    %54 = arith.addf %52, %53 : vector<1x128xf32>
    %55 = math.rsqrt %54 : vector<1x128xf32>
    %56 = arith.mulf %35, %55 : vector<1x128xf32>
    %57 = arith.mulf %43, %56 : vector<1x128xf32>
    %58 = arith.subf %36, %57 : vector<1x128xf32>
    %59 = vector.broadcast %56 : vector<1x128xf32> to vector<8x128xf32>
    %60 = arith.mulf %39, %59 : vector<8x128xf32>
    %61 = vector.broadcast %58 : vector<1x128xf32> to vector<8x128xf32>
    %62 = arith.addf %60, %61 : vector<8x128xf32>
    %cst_31 = arith.constant 0.000000e+00 : f32
    %63 = vector.broadcast %cst_31 : f32 to vector<8x128xf32>
    %64 = arith.maximumf %62, %63 : vector<8x128xf32>
    %c0_32 = arith.constant 0 : index
    %c0_33 = arith.constant 0 : index
    %65 = vector.load %arg9[%c0_32, %c0_33] : memref<128x128xf32, #tpu.memory_space<vmem>>, vector<128x128xf32>
    %c0_34 = arith.constant 0 : index
    %c0_35 = arith.constant 0 : index
    %66 = vector.load %arg10[%c0_34, %c0_35] : memref<1x128xf32, #tpu.memory_space<vmem>>, vector<1x128xf32>
    %cst_36 = arith.constant dense<0.000000e+00> : vector<8x128xf32>
    %67 = tpu.matmul %64, %65, %cst_36 {dimension_numbers = #tpu.dot_dimension_numbers<[1], [0], [0], [1], [0, 0, 1, 1], [], []>} : vector<8x128xf32>, vector<128x128xf32>, vector<8x128xf32> -> vector<8x128xf32>
    %68 = vector.broadcast %66 : vector<1x128xf32> to vector<8x128xf32>
    %69 = arith.addf %67, %68 : vector<8x128xf32>
    %c0_37 = arith.constant 0 : index
    %c0_38 = arith.constant 0 : index
    %70 = vector.load %arg11[%c0_37, %c0_38] : memref<8x128xf32, #tpu.memory_space<vmem>>, vector<8x128xf32>
    tpu.vector_store %arg11[%c0_37, %c0_38], %69 {strides = array<i32>} : memref<8x128xf32, #tpu.memory_space<vmem>>, vector<8x128xf32>,
    return
  }
}

</mosaic_0001>

<bundles_post_ra>
// kernel: tpu_custom_call.1
= control target key start
LH: loop header
LB: loop body
LE: loop exit
PB: predicated region body
PF: predicated region fallthrough
CT: control target
= control target key end

     0   :  { %16 = vsyncpa [#allocation3], 0  ;;  %s1346_s0 = inlined_call_operand.hbm [shape: f32[8,128], index: 0, kind: input, shape index: {}]   ;;  %s1347_s1 = inlined_call_operand.hbm [shape: f32[128,128], index: 1, kind: input, shape index: {}]   ;;  %s1348_s2 = inlined_call_operand.hbm [shape: f32[1,128], index: 2, kind: input, shape index: {}]   ;;  %s1349_s3 = inlined_call_operand.hbm [shape: f32[1,128], index: 3, kind: input, shape index: {}]   ;;  %s1350_s4 = inlined_call_operand.hbm [shape: f32[1,128], index: 4, kind: input, shape index: {}]   ;;  %s1351_s5 = inlined_call_operand.hbm [shape: f32[128,128], index: 5, kind: input, shape index: {}]   ;;  %s1352_s6 = inlined_call_operand.hbm [shape: f32[1,128], index: 6, kind: input, shape index: {}]   ;;  %s1353_s7 = inlined_call_operand.hbm [shape: f32[1,128], index: 7, kind: input, shape index: {}]   ;;  %s1354_s8 = inlined_call_operand.hbm [shape: f32[1,128], index: 8, kind: input, shape index: {}]   ;;  %s1355_s9 = inlined_call_operand.hbm [shape: f32[128,128], index: 9, kind: input, shape index: {}]   ;;  %s1356_s10 = inlined_call_operand.hbm [shape: f32[1,128], index: 10, kind: input, shape index: {}]   ;;  %s1357_s11 = inlined_call_operand.hbm [shape: f32[8,128], index: 11, kind: output, shape index: {}]  }
   0x1   :  { %17 = vsyncpa [#allocation6], 0 }
   0x2   :  { %18 = vsyncpa [#allocation9], 0 }
   0x3   :  { %19 = vsyncpa [#allocation12], 0 }
   0x4   :  { %20 = vsyncpa [#allocation15], 0 }
   0x5   :  { %21 = vsyncpa [#allocation18], 0 }
   0x6   :  { %22 = vsyncpa [#allocation4], 0  ;;  %s1083_s17 = smov [#allocation5]   ;;  %s805_s21 = scalar_lea.hbm %s1347_s1, 2048 }
   0x7   :  { %s38_s18 = sshll.u32 %s1083_s17, 4  ;;  %p806_p0 = scmp.ne.s32.totalorder %s1347_s1, %s805_s21  ;;  %s39_s18 = int_to_ptr.vmem [resolvable:$true] %s38_s18 }
   0x8   :  { %p809_p1 = scmp.lt.u32.totalorder %s805_s21, %s1347_s1 }
   0xa   :  { %p811_p2 = pnand %p809_p1, %p806_p0 }
   0xc   :  { %814 = shalt.err (!%p811_p2)
}
   0xd   :  { %s815_s26 = scalar_lea.vmem %s39_s18, 2048  ;;  %p820_p4 = scmp.lt.s32.totalorder %s39_s18, %s39_s18 }
   0xe   :  { %p816_p3 = scmp.ne.s32.totalorder %s39_s18, %s815_s26  ;;  %p821_p5 = scmp.lt.s32.totalorder %s815_s26, %s815_s26 }
  0x10   :  { %p822_p6 = por %p821_p5, %p820_p4 }
  0x12   :  { %p823_p7 = pnand %p822_p6, %p816_p3 }
  0x14   :  { %826 = shalt.err (!%p823_p7)
}
  0x15   :  { %s1084_s27 = smov 128   ;;  %s1085_s28 = smov 8  }
  0x16   :  { %44 = dma.hbm_to_vmem [thread:$0]  %s1347_s1, 2048, %s39_s18, [#allocation6], %s1084_s27, %s1084_s27, %s1085_s28  }
  0x17   :  { %s1086_s12 = smov [#allocation8]   ;;  %s1087_s14 = smov [#allocation11]  }
  0x18   :  { %s61_s13 = sshll.u32 %s1086_s12, 4  ;;  %s80_s15 = sshll.u32 %s1087_s14, 4  ;;  %s62_s13 = int_to_ptr.vmem [resolvable:$true] %s61_s13  ;;  %s81_s15 = int_to_ptr.vmem [resolvable:$true] %s80_s15 }
  0x19   :  { %s827_s19 = scalar_lea.hbm %s1349_s3, 16 }
  0x1a   :  { %p828_p8 = scmp.ne.s32.totalorder %s1349_s3, %s827_s19  ;;  %p831_p9 = scmp.lt.u32.totalorder %s827_s19, %s1349_s3 }
  0x1c   :  { %p833_p10 = pnand %p831_p9, %p828_p8 }
  0x1e   :  { %836 = shalt.err (!%p833_p10)
}
  0x1f   :  { %s837_s1 = scalar_lea.vmem %s62_s13, 16  ;;  %s841_s18 = scalar_lea.vmem %s62_s13, 32 }
  0x20   :  { %p838_p11 = scmp.ne.s32.totalorder %s62_s13, %s837_s1  ;;  %p842_p12 = scmp.lt.s32.totalorder %s62_s13, %s62_s13 }
  0x21   :  { %p843_p13 = scmp.lt.s32.totalorder %s841_s18, %s837_s1 }
  0x23   :  { %p844_p0 = por %p843_p13, %p842_p12 }
  0x25   :  { %p845_p1 = pnand %p844_p0, %p838_p11 }
  0x27   :  { %848 = shalt.err (!%p845_p1)
}
  0x28   :  { %64 = dma.hbm_to_vmem [thread:$0]  %s1349_s3, 16, %s62_s13, [#allocation9]  }
  0x29   :  { %s849_s30 = scalar_lea.hbm %s1351_s5, 2048 }
  0x2a   :  { %p850_p2 = scmp.ne.s32.totalorder %s1351_s5, %s849_s30  ;;  %p853_p3 = scmp.lt.u32.totalorder %s849_s30, %s1351_s5 }
  0x2c   :  { %p855_p4 = pnand %p853_p3, %p850_p2 }
  0x2e   :  { %858 = shalt.err (!%p855_p4)
}
  0x2f   :  { %s859_s19 = scalar_lea.vmem %s81_s15, 2048  ;;  %p864_p6 = scmp.lt.s32.totalorder %s81_s15, %s81_s15 }
  0x30   :  { %p860_p5 = scmp.ne.s32.totalorder %s81_s15, %s859_s19  ;;  %p865_p7 = scmp.lt.s32.totalorder %s859_s19, %s859_s19 }
  0x32   :  { %p866_p8 = por %p865_p7, %p864_p6 }
  0x34   :  { %p867_p9 = pnand %p866_p8, %p860_p5 }
  0x36   :  { %870 = shalt.err (!%p867_p9)
}
  0x37   :  { %86 = dma.hbm_to_vmem [thread:$0]  %s1351_s5, 2048, %s81_s15, [#allocation12], %s1084_s27, %s1084_s27, %s1085_s28  }
  0x38   :  { %s1088_s20 = smov [#allocation14]   ;;  %s1089_s22 = smov [#allocation17]  }
  0x39   :  { %s103_s21 = sshll.u32 %s1088_s20, 4  ;;  %s122_s23 = sshll.u32 %s1089_s22, 4  ;;  %s104_s21 = int_to_ptr.vmem [resolvable:$true] %s103_s21  ;;  %s123_s23 = int_to_ptr.vmem [resolvable:$true] %s122_s23 }
  0x3a   :  { %s871_s24 = scalar_lea.hbm %s1353_s7, 16 }
  0x3b   :  { %p872_p10 = scmp.ne.s32.totalorder %s1353_s7, %s871_s24  ;;  %p875_p11 = scmp.lt.u32.totalorder %s871_s24, %s1353_s7 }
  0x3d   :  { %p877_p12 = pnand %p875_p11, %p872_p10 }
  0x3f   :  { %880 = shalt.err (!%p877_p12)
}
  0x40   :  { %s881_s5 = scalar_lea.vmem %s104_s21, 16  ;;  %s885_s15 = scalar_lea.vmem %s104_s21, 32 }
  0x41   :  { %p882_p13 = scmp.ne.s32.totalorder %s104_s21, %s881_s5  ;;  %p886_p0 = scmp.lt.s32.totalorder %s104_s21, %s104_s21 }
  0x42   :  { %p887_p1 = scmp.lt.s32.totalorder %s885_s15, %s881_s5 }
  0x44   :  { %p888_p2 = por %p887_p1, %p886_p0 }
  0x46   :  { %p889_p3 = pnand %p888_p2, %p882_p13 }
  0x48   :  { %892 = shalt.err (!%p889_p3)
}
  0x49   :  { %106 = dma.hbm_to_vmem [thread:$0]  %s1353_s7, 16, %s104_s21, [#allocation15]  }
  0x4a   :  { %s893_s19 = scalar_lea.hbm %s1355_s9, 2048 }
  0x4b   :  { %p894_p4 = scmp.ne.s32.totalorder %s1355_s9, %s893_s19  ;;  %p897_p5 = scmp.lt.u32.totalorder %s893_s19, %s1355_s9 }
  0x4d   :  { %p899_p6 = pnand %p897_p5, %p894_p4 }
  0x4f   :  { %902 = shalt.err (!%p899_p6)
}
  0x50   :  { %s903_s1 = scalar_lea.vmem %s123_s23, 2048  ;;  %p908_p8 = scmp.lt.s32.totalorder %s123_s23, %s123_s23 }
  0x51   :  { %p904_p7 = scmp.ne.s32.totalorder %s123_s23, %s903_s1  ;;  %p909_p9 = scmp.lt.s32.totalorder %s903_s1, %s903_s1 }
  0x53   :  { %p910_p10 = por %p909_p9, %p908_p8 }
  0x55   :  { %p911_p11 = pnand %p910_p10, %p904_p7 }
  0x57   :  { %914 = shalt.err (!%p911_p11)
}
  0x58   :  { %128 = dma.hbm_to_vmem [thread:$0]  %s1355_s9, 2048, %s123_s23, [#allocation18], %s1084_s27, %s1084_s27, %s1085_s28  }
  0x59   :  { %s1090_s18 = smov [#allocation2]   ;;  %s1091_s25 = smov [#allocation7]  }
  0x5a   :  { %s29_s24 = sshll.u32 %s1090_s18, 4  ;;  %s51_s26 = sshll.u32 %s1091_s25, 4  ;;  %s30_s24 = int_to_ptr.vmem [resolvable:$true] %s29_s24  ;;  %s52_s26 = int_to_ptr.vmem [resolvable:$true] %s51_s26 }
  0x5b   :  { %s915_s5 = scalar_lea.hbm %s1346_s0, 128 }
  0x5c   :  { %p916_p12 = scmp.ne.s32.totalorder %s1346_s0, %s915_s5  ;;  %p919_p13 = scmp.lt.u32.totalorder %s915_s5, %s1346_s0 }
  0x5e   :  { %p921_p0 = pnand %p919_p13, %p916_p12 }
  0x60   :  { %924 = shalt.err (!%p921_p0)
}
  0x61   :  { %s925_s9 = scalar_lea.vmem %s30_s24, 128  ;;  %p930_p2 = scmp.lt.s32.totalorder %s30_s24, %s30_s24 }
  0x62   :  { %p926_p1 = scmp.ne.s32.totalorder %s30_s24, %s925_s9  ;;  %p931_p3 = scmp.lt.s32.totalorder %s925_s9, %s925_s9 }
  0x64   :  { %p932_p4 = por %p931_p3, %p930_p2 }
  0x66   :  { %p933_p5 = pnand %p932_p4, %p926_p1 }
  0x68   :  { %936 = shalt.err (!%p933_p5)
}
  0x69   :  { %32 = dma.hbm_to_vmem [thread:$0]  %s1346_s0, 128, %s30_s24, [#allocation3]  }
  0x6a   :  { %s937_s19 = scalar_lea.hbm %s1348_s2, 16 }
  0x6b   :  { %p938_p6 = scmp.ne.s32.totalorder %s1348_s2, %s937_s19  ;;  %p941_p7 = scmp.lt.u32.totalorder %s937_s19, %s1348_s2 }
  0x6d   :  { %p943_p8 = pnand %p941_p7, %p938_p6 }
  0x6f   :  { %946 = shalt.err (!%p943_p8)
}
  0x70   :  { %s947_s1 = scalar_lea.vmem %s52_s26, 16  ;;  %s951_s7 = scalar_lea.vmem %s52_s26, 32 }
  0x71   :  { %p948_p9 = scmp.ne.s32.totalorder %s52_s26, %s947_s1  ;;  %p952_p10 = scmp.lt.s32.totalorder %s52_s26, %s52_s26 }
  0x72   :  { %p953_p11 = scmp.lt.s32.totalorder %s951_s7, %s947_s1 }
  0x74   :  { %p954_p12 = por %p953_p11, %p952_p10 }
  0x76   :  { %p955_p13 = pnand %p954_p12, %p948_p9 }
  0x78   :  { %958 = shalt.err (!%p955_p13)
}
  0x79   :  { %54 = dma.hbm_to_vmem [thread:$0]  %s1348_s2, 16, %s52_s26, [#allocation6]  }
  0x7a   :  { %s1092_s18 = smov [#allocation10]   ;;  %s1093_s25 = smov [#allocation13]  }
  0x7b   :  { %s71_s24 = sshll.u32 %s1092_s18, 4  ;;  %s93_s29 = sshll.u32 %s1093_s25, 4  ;;  %s72_s24 = int_to_ptr.vmem [resolvable:$true] %s71_s24  ;;  %s94_s29 = int_to_ptr.vmem [resolvable:$true] %s93_s29 }
  0x7c   :  { %s959_s15 = scalar_lea.hbm %s1350_s4, 16 }
  0x7d   :  { %p960_p0 = scmp.ne.s32.totalorder %s1350_s4, %s959_s15  ;;  %p963_p1 = scmp.lt.u32.totalorder %s959_s15, %s1350_s4 }
  0x7f   :  { %p965_p2 = pnand %p963_p1, %p960_p0 }
  0x81   :  { %968 = shalt.err (!%p965_p2)
}
  0x82   :  { %s969_s2 = scalar_lea.vmem %s72_s24, 16  ;;  %s973_s26 = scalar_lea.vmem %s72_s24, 32 }
  0x83   :  { %p970_p3 = scmp.ne.s32.totalorder %s72_s24, %s969_s2  ;;  %p974_p4 = scmp.lt.s32.totalorder %s72_s24, %s72_s24 }
  0x84   :  { %p975_p5 = scmp.lt.s32.totalorder %s973_s26, %s969_s2 }
  0x86   :  { %p976_p6 = por %p975_p5, %p974_p4 }
  0x88   :  { %p977_p7 = pnand %p976_p6, %p970_p3 }
  0x8a   :  { %980 = shalt.err (!%p977_p7)
}
  0x8b   :  { %74 = dma.hbm_to_vmem [thread:$0]  %s1350_s4, 16, %s72_s24, [#allocation9]  }
  0x8c   :  { %s981_s19 = scalar_lea.hbm %s1352_s6, 16 }
  0x8d   :  { %p982_p8 = scmp.ne.s32.totalorder %s1352_s6, %s981_s19  ;;  %p985_p9 = scmp.lt.u32.totalorder %s981_s19, %s1352_s6 }
  0x8f   :  { %p987_p10 = pnand %p985_p9, %p982_p8 }
  0x91   :  { %990 = shalt.err (!%p987_p10)
}
  0x92   :  { %s991_s1 = scalar_lea.vmem %s94_s29, 16  ;;  %s995_s7 = scalar_lea.vmem %s94_s29, 32 }
  0x93   :  { %p992_p11 = scmp.ne.s32.totalorder %s94_s29, %s991_s1  ;;  %p996_p12 = scmp.lt.s32.totalorder %s94_s29, %s94_s29 }
  0x94   :  { %p997_p13 = scmp.lt.s32.totalorder %s995_s7, %s991_s1 }
  0x96   :  { %p998_p0 = por %p997_p13, %p996_p12 }
  0x98   :  { %p999_p1 = pnand %p998_p0, %p992_p11 }
  0x9a   :  { %1002 = shalt.err (!%p999_p1)
}
  0x9b   :  { %96 = dma.hbm_to_vmem [thread:$0]  %s1352_s6, 16, %s94_s29, [#allocation12]  }
  0x9c   :  { %s1094_s21 = smov [#allocation16]   ;;  %s1095_s24 = smov [#allocation19]  }
  0x9d   :  { %s113_s18 = sshll.u32 %s1094_s21, 4  ;;  %s135_s25 = sshll.u32 %s1095_s24, 4  ;;  %s114_s18 = int_to_ptr.vmem [resolvable:$true] %s113_s18  ;;  %s136_s25 = int_to_ptr.vmem [resolvable:$true] %s135_s25 }
  0x9e   :  { %s1003_s15 = scalar_lea.hbm %s1354_s8, 16 }
  0x9f   :  { %p1004_p2 = scmp.ne.s32.totalorder %s1354_s8, %s1003_s15  ;;  %p1007_p3 = scmp.lt.u32.totalorder %s1003_s15, %s1354_s8 }
  0xa1   :  { %p1009_p4 = pnand %p1007_p3, %p1004_p2 }
  0xa3   :  { %1012 = shalt.err (!%p1009_p4)
}
  0xa4   :  { %s1013_s6 = scalar_lea.vmem %s114_s18, 16  ;;  %s1017_s29 = scalar_lea.vmem %s114_s18, 32 }
  0xa5   :  { %p1014_p5 = scmp.ne.s32.totalorder %s114_s18, %s1013_s6  ;;  %p1018_p6 = scmp.lt.s32.totalorder %s114_s18, %s114_s18 }
  0xa6   :  { %p1019_p7 = scmp.lt.s32.totalorder %s1017_s29, %s1013_s6 }
  0xa8   :  { %p1020_p8 = por %p1019_p7, %p1018_p6 }
  0xaa   :  { %p1021_p9 = pnand %p1020_p8, %p1014_p5 }
  0xac   :  { %1024 = shalt.err (!%p1021_p9)
}
  0xad   :  { %116 = dma.hbm_to_vmem [thread:$0]  %s1354_s8, 16, %s114_s18, [#allocation15]  }
  0xae   :  { %s1025_s23 = scalar_lea.hbm %s1356_s10, 16 }
  0xaf   :  { %p1026_p10 = scmp.ne.s32.totalorder %s1356_s10, %s1025_s23  ;;  %p1029_p11 = scmp.lt.u32.totalorder %s1025_s23, %s1356_s10 }
  0xb1   :  { %p1031_p12 = pnand %p1029_p11, %p1026_p10 }
  0xb3   :  { %1034 = shalt.err (!%p1031_p12)
}
  0xb4   :  { %s1035_s20 = scalar_lea.vmem %s136_s25, 16  ;;  %s1039_s22 = scalar_lea.vmem %s136_s25, 32 }
  0xb5   :  { %p1036_p13 = scmp.ne.s32.totalorder %s136_s25, %s1035_s20  ;;  %p1040_p0 = scmp.lt.s32.totalorder %s136_s25, %s136_s25 }
  0xb6   :  { %p1041_p1 = scmp.lt.s32.totalorder %s1039_s22, %s1035_s20 }
  0xb8   :  { %p1042_p2 = por %p1041_p1, %p1040_p0 }
  0xba   :  { %p1043_p3 = pnand %p1042_p2, %p1036_p13 }
  0xbc   :  { %1046 = shalt.err (!%p1043_p3)
}
  0xbd   :  { %138 = dma.hbm_to_vmem [thread:$0]  %s1356_s10, 16, %s136_s25, [#allocation18]  }
  0xbe   :  { %1069 = dma.done.wait [#allocation3], 128  }
  0xbf   :  { %1070 = vsyncadd [#allocation3], 4294967168 }
  0xc0   :  { %1071 = dma.done.wait [#allocation6], 2064  }
  0xc1   :  { %1072 = vsyncadd [#allocation6], 4294965232 }
  0xc2   :  { %1073 = dma.done.wait [#allocation9], 32  }
  0xc3   :  { %1074 = vsyncadd [#allocation9], 4294967264 }
  0xc4   :  { %1075 = dma.done.wait [#allocation12], 2064  }
  0xc5   :  { %1076 = vsyncadd [#allocation12], 4294965232 }
  0xc6   :  { %1077 = dma.done.wait [#allocation15], 32  }
  0xc7   :  { %1078 = vsyncadd [#allocation15], 4294967264 }
  0xc8   :  { %1079 = dma.done.wait [#allocation18], 2064  }
  0xc9   :  { %1080 = vsyncadd [#allocation18], 4294965232  ;;  %v1096_v0 = vmov 0.0|0.0   ;;  %vm1097_vm0 = vmmov 0   ;;  %v1098_v1 = vmov 0.0   ;;  %v173_v2 = vld [vmem:[#allocation5] sm:$0xff] }
  0xca   :  { %712 = vmatprep.subr.bf16.mxu0 %v1096_v0  ;;  %639 = vmatprep.mubr.msk.f32.mxu0 %vm1097_vm0, %v1098_v1  ;;  %v174_v3 = vld [vmem:[#allocation5 + $0x8] sm:$0xff]  ;;  %v175_v4 = vld [vmem:[#allocation5 + $0x10] sm:$0xff]  ;;  %v176_v6 = vld [vmem:[#allocation5 + $0x18] sm:$0xff]  ;;  %s1099_s10 = smov [#allocation20]  }
  0xcb   :  { %736 = vmatprep.subr.bf16.mxu1 %v1096_v0  ;;  %674 = vmatprep.mubr.msk.f32.mxu1 %vm1097_vm0, %v1098_v1  ;;  %v713_v5 = vpack.c.bf16 %v174_v3, %v173_v2  ;;  %v716_v7 = vpack.c.bf16 %v176_v6, %v175_v4  ;;  %v177_v8 = vld [vmem:[#allocation5 + $0x20] sm:$0xff]  ;;  %v178_v9 = vld [vmem:[#allocation5 + $0x28] sm:$0xff]  ;;  %v179_v11 = vld [vmem:[#allocation5 + $0x30] sm:$0xff]  ;;  %s539_s7 = sshll.u32 %s1099_s10, 4  ;;  %s540_s7 = int_to_ptr.vmem [resolvable:$true] %s539_s7 }
  0xcc   :  { %v719_v10 = vpack.c.bf16 %v178_v9, %v177_v8  ;;  %v180_v12 = vld [vmem:[#allocation5 + $0x38] sm:$0xff]  ;;  %v181_v14 = vld [vmem:[#allocation5 + $0x40] sm:$0xff]  ;;  %v182_v15 = vld [vmem:[#allocation5 + $0x48] sm:$0xff]  ;;  %s1047_s4 = scalar_lea.vmem %s540_s7, 128  ;;  %p1052_p5 = scmp.lt.s32.totalorder %s540_s7, %s540_s7 }
  0xcd   :  { %714 = vmatpush3.bf16.msra.mxu0 %v713_v5  ;;  %v722_v13 = vpack.c.bf16 %v180_v12, %v179_v11  ;;  %v725_v16 = vpack.c.bf16 %v182_v15, %v181_v14  ;;  %v183_v17 = vld [vmem:[#allocation5 + $0x50] sm:$0xff]  ;;  %v184_v18 = vld [vmem:[#allocation5 + $0x58] sm:$0xff]  ;;  %v185_v20 = vld [vmem:[#allocation5 + $0x60] sm:$0xff]  ;;  %v292_v11 = vlaneseq  ;;  %p1048_p4 = scmp.ne.s32.totalorder %s540_s7, %s1047_s4  ;;  %p1053_p6 = scmp.lt.s32.totalorder %s1047_s4, %s1047_s4 }
  0xce   :  { %715 = vmatprep.subr.bf16.mxu0 %v1096_v0  ;;  %v728_v19 = vpack.c.bf16 %v184_v18, %v183_v17  ;;  %v186_v21 = vld [vmem:[#allocation5 + $0x68] sm:$0xff]  ;;  %v187_v23 = vld [vmem:[#allocation5 + $0x70] sm:$0xff]  ;;  %v188_v24 = vld [vmem:[#allocation5 + $0x78] sm:$0xff] }
  0xcf   :  { %v731_v22 = vpack.c.bf16 %v186_v21, %v185_v20  ;;  %v734_v25 = vpack.c.bf16 %v188_v24, %v187_v23  ;;  %v172_v26 = vld [vmem:[#allocation2] sm:$0xff]  ;;  %v306_v27 = vld [vmem:[#allocation11] sm:$0xff]  ;;  %v307_v28 = vld [vmem:[#allocation11 + $0x8] sm:$0xff]  ;;  %v293_v12 = vshrl.u32 %v292_v11, 7  ;;  %p1054_p7 = por %p1053_p6, %p1052_p5 }
  0xd0   :  { %v737_v29 = vpack.c.bf16 %v307_v28, %v306_v27  ;;  %v308_v30 = vld [vmem:[#allocation11 + $0x10] sm:$0xff]  ;;  %v309_v31 = vld [vmem:[#allocation11 + $0x18] sm:$0xff]  ;;  %v310_v33 = vld [vmem:[#allocation11 + $0x20] sm:$0xff] }
  0xd1   :  { %717 = vmatpush3.bf16.msra.mxu0 %v716_v7  ;;  %v740_v32 = vpack.c.bf16 %v309_v31, %v308_v30  ;;  %v311_v34 = vld [vmem:[#allocation11 + $0x28] sm:$0xff]  ;;  %v312_v36 = vld [vmem:[#allocation11 + $0x30] sm:$0xff]  ;;  %v313_v37 = vld [vmem:[#allocation11 + $0x38] sm:$0xff]  ;;  %v1321_v14 = vsub.s32 0, %v293_v12  ;;  %p1055_p8 = pnand %p1054_p7, %p1048_p4 }
  0xd2   :  { %718 = vmatprep.subr.bf16.mxu0 %v1096_v0  ;;  %738 = vmatpush3.bf16.msra.mxu1 %v737_v29  ;;  %v743_v35 = vpack.c.bf16 %v311_v34, %v310_v33  ;;  %v746_v38 = vpack.c.bf16 %v313_v37, %v312_v36  ;;  %v314_v39 = vld [vmem:[#allocation11 + $0x40] sm:$0xff]  ;;  %v315_v40 = vld [vmem:[#allocation11 + $0x48] sm:$0xff]  ;;  %v316_v42 = vld [vmem:[#allocation11 + $0x50] sm:$0xff] }
  0xd3   :  { %739 = vmatprep.subr.bf16.mxu1 %v1096_v0  ;;  %v749_v41 = vpack.c.bf16 %v315_v40, %v314_v39  ;;  %v317_v43 = vld [vmem:[#allocation11 + $0x58] sm:$0xff]  ;;  %v318_v45 = vld [vmem:[#allocation11 + $0x60] sm:$0xff]  ;;  %v319_v46 = vld [vmem:[#allocation11 + $0x68] sm:$0xff] }
  0xd4   :  { %v752_v44 = vpack.c.bf16 %v317_v43, %v316_v42  ;;  %v755_v47 = vpack.c.bf16 %v319_v46, %v318_v45  ;;  %v320_v48 = vld [vmem:[#allocation11 + $0x70] sm:$0xff]  ;;  %v321_v49 = vld [vmem:[#allocation11 + $0x78] sm:$0xff]  ;;  %v443_v31 = vld [vmem:[#allocation17 + $0x20] sm:$0xff] }
  0xd5   :  { %720 = vmatpush3.bf16.msra.mxu0 %v719_v10  ;;  %v758_v50 = vpack.c.bf16 %v321_v49, %v320_v48  ;;  %v553_v51 = vld [vmem:[#allocation7] ss:$0 sm:$0xff]  ;;  %v191_v17 = vld [vmem:[#allocation10] sm:$0x1]  ;;  %v447_v37 = vld [vmem:[#allocation17 + $0x40] sm:$0xff] }
  0xd6   :  { %721 = vmatprep.subr.bf16.mxu0 %v1096_v0  ;;  %741 = vmatpush3.bf16.msra.mxu1 %v740_v32  ;;  %v441_v28 = vld [vmem:[#allocation17 + $0x10] sm:$0xff]  ;;  %v442_v29 = vld [vmem:[#allocation17 + $0x18] sm:$0xff]  ;;  %v444_v32 = vld [vmem:[#allocation17 + $0x28] sm:$0xff] }
  0xd7   :  { %742 = vmatprep.subr.bf16.mxu1 %v1096_v0  ;;  %v764_v30 = vpack.c.bf16 %v442_v29, %v441_v28  ;;  %v767_v33 = vpack.c.bf16 %v444_v32, %v443_v31  ;;  %v445_v34 = vld [vmem:[#allocation17 + $0x30] sm:$0xff]  ;;  %v451_v43 = vld [vmem:[#allocation17 + $0x60] sm:$0xff]  ;;  %v554_v49 = vld [vmem:[#allocation13] ss:$0 sm:$0xff] }
  0xd8   :  { %v449_v40 = vld [vmem:[#allocation17 + $0x50] sm:$0xff]  ;;  %v324_v11 = vld [vmem:[#allocation16] sm:$0x1] }
  0xd9   :  { %723 = vmatpush3.bf16.msra.mxu0 %v722_v13  ;;  %v190_v13 = vld [vmem:[#allocation8] sm:$0x1] }
  0xda   :  { %724 = vmatprep.subr.bf16.mxu0 %v1096_v0  ;;  %744 = vmatpush3.bf16.msra.mxu1 %v743_v35  ;;  %v446_v35 = vld [vmem:[#allocation17 + $0x38] sm:$0xff]  ;;  %v453_v46 = vld [vmem:[#allocation17 + $0x70] sm:$0xff] }
  0xdb   :  { %745 = vmatprep.subr.bf16.mxu1 %v1096_v0  ;;  %v770_v36 = vpack.c.bf16 %v446_v35, %v445_v34 }
  0xdd   :  { %726 = vmatpush3.bf16.msra.mxu0 %v725_v16 }
  0xde   :  { %727 = vmatprep.subr.bf16.mxu0 %v1096_v0  ;;  %747 = vmatpush3.bf16.msra.mxu1 %v746_v38  ;;  %v448_v38 = vld [vmem:[#allocation17 + $0x48] sm:$0xff] }
  0xdf   :  { %748 = vmatprep.subr.bf16.mxu1 %v1096_v0  ;;  %v773_v39 = vpack.c.bf16 %v448_v38, %v447_v37 }
  0xe1   :  { %729 = vmatpush3.bf16.msra.mxu0 %v728_v19 }
  0xe2   :  { %730 = vmatprep.subr.bf16.mxu0 %v1096_v0  ;;  %750 = vmatpush3.bf16.msra.mxu1 %v749_v41  ;;  %v450_v41 = vld [vmem:[#allocation17 + $0x58] sm:$0xff] }
  0xe3   :  { %751 = vmatprep.subr.bf16.mxu1 %v1096_v0  ;;  %v776_v42 = vpack.c.bf16 %v450_v41, %v449_v40 }
  0xe5   :  { %732 = vmatpush3.bf16.msra.mxu0 %v731_v22 }
  0xe6   :  { %733 = vmatprep.subr.bf16.mxu0 %v1096_v0  ;;  %753 = vmatpush3.bf16.msra.mxu1 %v752_v44  ;;  %v452_v44 = vld [vmem:[#allocation17 + $0x68] sm:$0xff] }
  0xe7   :  { %754 = vmatprep.subr.bf16.mxu1 %v1096_v0  ;;  %v779_v45 = vpack.c.bf16 %v452_v44, %v451_v43 }
  0xe9   :  { %735 = vmatpush3.bf16.msra.mxu0 %v734_v25  ;;  %v439_v25 = vld [vmem:[#allocation17] sm:$0xff] }
  0xea   :  { %760 = vmatprep.subr.bf16.mxu0 %v1096_v0  ;;  %756 = vmatpush3.bf16.msra.mxu1 %v755_v47  ;;  %v454_v47 = vld [vmem:[#allocation17 + $0x78] sm:$0xff] }
  0xeb   :  { %757 = vmatprep.subr.bf16.mxu1 %v1096_v0  ;;  %v782_v48 = vpack.c.bf16 %v454_v47, %v453_v46 }
  0xec   :  { %640 = vmatmul.mubr.f32.vlgmr.msra.gmra.mrb[0].mxu0 %v172_v26  ;;  %v440_v26 = vld [vmem:[#allocation17 + $0x8] sm:$0xff] }
  0xed   :  { %709 = vmatprep.mubr.msk.f32.mxu0 %vm1097_vm0, %v1098_v1  ;;  %v761_v27 = vpack.c.bf16 %v440_v26, %v439_v25 }
  0xee   :  { %759 = vmatpush3.bf16.msra.mxu1 %v758_v50 }
  0xef   :  { %762 = vmatpush3.bf16.msra.mxu0 %v761_v27 }
  0xf0   :  { %763 = vmatprep.subr.bf16.mxu0 %v1096_v0 }
  0xf3   :  { %765 = vmatpush3.bf16.msra.mxu0 %v764_v30 }
  0xf4   :  { %766 = vmatprep.subr.bf16.mxu0 %v1096_v0 }
  0xf7   :  { %768 = vmatpush3.bf16.msra.mxu0 %v767_v33 }
  0xf8   :  { %769 = vmatprep.subr.bf16.mxu0 %v1096_v0 }
  0xfb   :  { %771 = vmatpush3.bf16.msra.mxu0 %v770_v36 }
  0xfc   :  { %772 = vmatprep.subr.bf16.mxu0 %v1096_v0 }
  0xff   :  { %774 = vmatpush3.bf16.msra.mxu0 %v773_v39 }
 0x100   :  { %775 = vmatprep.subr.bf16.mxu0 %v1096_v0 }
 0x103   :  { %777 = vmatpush3.bf16.msra.mxu0 %v776_v42 }
 0x104   :  { %778 = vmatprep.subr.bf16.mxu0 %v1096_v0 }
 0x107   :  { %780 = vmatpush3.bf16.msra.mxu0 %v779_v45 }
 0x108   :  { %781 = vmatprep.subr.bf16.mxu0 %v1096_v0 }
 0x10b   :  { %783 = vmatpush3.bf16.msra.mxu0 %v782_v48 }
 0x1bf   :  { %v264_v52 = vpop.f32.mrb[0].mxu0 }
 0x1c0   :  { %v265_v53 = vadd.f32 %v553_v51, %v264_v52  ;;  %v641_v54 = vpop.f32.mrb[1].mxu0 }
 0x1c2   :  { %v268_v55 = vrot.slane %v265_v53, 4  ;;  %v275_v56 = vmul.f32 %v265_v53, %v265_v53 }
 0x1c4   :  { %v269_v57 = vadd.f32 %v268_v55, %v265_v53  ;;  %v276_v58 = vrot.slane %v275_v56, 4 }
 0x1c6   :  { %v270_v59 = vrot.slane %v269_v57, 2  ;;  %v277_v60 = vadd.f32 %v276_v58, %v275_v56 }
 0x1c8   :  { %v271_v61 = vadd.f32 %v270_v59, %v269_v57  ;;  %v278_v62 = vrot.slane %v277_v60, 2 }
 0x1ca   :  { %v272_v63 = vrot.slane %v271_v61, 1  ;;  %v279_v1 = vadd.f32 %v278_v62, %v277_v60 }
 0x1cc   :  { %v273_v2 = vadd.f32 %v272_v63, %v271_v61  ;;  %v280_v3 = vrot.slane %v279_v1, 1 }
 0x1ce   :  { %v281_v4 = vadd.f32 %v280_v3, %v279_v1  ;;  %v274_v5 = vmul.f32 0.125, %v273_v2 }
 0x1d0   :  { %v282_v6 = vmul.f32 0.125, %v281_v4  ;;  %v283_v7 = vmul.f32 %v274_v5, %v274_v5 }
 0x1d2   :  { %v284_v8 = vsub.f32 %v282_v6, %v283_v7 }
 0x1d4   :  { %v285_v9 = vmax.f32 %v284_v8, 0.0  ;;  %v323_v8 = vld [vmem:[#allocation14] sm:$0x1] }
 0x1d6   :  { %v286_v10 = vadd.f32 1e-05, %v285_v9 }
 0x1d8   :  { %801 = vrsqrt.f32 %v286_v10 }
 0x1e2   :  { %v802_v15 = vpop.eup %801 }
 0x1e3   :  { %v288_v16 = vmul.f32 %v802_v15, %v190_v13 }
 0x1e5   :  { %v289_v18 = vmul.f32 %v288_v16, %v274_v5  ;;  %v295_v19 = vrot.slane %v288_v16, %v1321_v14 }
 0x1e7   :  { %v290_v20 = vsub.f32 %v191_v17, %v289_v18  ;;  %v297_v21 = vmul.f32 %v295_v19, %v265_v53 }
 0x1e9   :  { %v302_v22 = vrot.slane %v290_v20, %v1321_v14  ;;  %v555_v20 = vld [vmem:[#allocation19] ss:$0 sm:$0xff] }
 0x1eb   :  { %v304_v23 = vadd.f32 %v302_v22, %v297_v21 }
 0x1ed   :  { %v305_v24 = vmax.f32 %v304_v23, 0.0 }
 0x1ef   :  { %675 = vmatmul.mubr.f32.vlgmr.msra.gmra.mrb[0].mxu1 %v305_v24 }
 0x2c2   :  { %v397_v50 = vpop.f32.mrb[0].mxu1 }
 0x2c3   :  { %v398_v51 = vadd.f32 %v554_v49, %v397_v50  ;;  %v676_v52 = vpop.f32.mrb[1].mxu1 }
 0x2c5   :  { %v401_v53 = vrot.slane %v398_v51, 4  ;;  %v408_v54 = vmul.f32 %v398_v51, %v398_v51 }
 0x2c7   :  { %v402_v55 = vadd.f32 %v401_v53, %v398_v51  ;;  %v409_v56 = vrot.slane %v408_v54, 4 }
 0x2c9   :  { %v403_v57 = vrot.slane %v402_v55, 2  ;;  %v410_v58 = vadd.f32 %v409_v56, %v408_v54 }
 0x2cb   :  { %v404_v59 = vadd.f32 %v403_v57, %v402_v55  ;;  %v411_v60 = vrot.slane %v410_v58, 2 }
 0x2cd   :  { %v405_v61 = vrot.slane %v404_v59, 1  ;;  %v412_v62 = vadd.f32 %v411_v60, %v410_v58 }
 0x2cf   :  { %v406_v63 = vadd.f32 %v405_v61, %v404_v59  ;;  %v413_v1 = vrot.slane %v412_v62, 1 }
 0x2d1   :  { %v407_v2 = vmul.f32 0.125, %v406_v63  ;;  %v414_v3 = vadd.f32 %v413_v1, %v412_v62 }
 0x2d3   :  { %v415_v0 = vmul.f32 0.125, %v414_v3  ;;  %v416_v4 = vmul.f32 %v407_v2, %v407_v2 }
 0x2d5   :  { %v417_v5 = vsub.f32 %v415_v0, %v416_v4 }
 0x2d7   :  { %v418_v6 = vmax.f32 %v417_v5, 0.0 }
 0x2d9   :  { %v419_v7 = vadd.f32 1e-05, %v418_v6 }
 0x2db   :  { %803 = vrsqrt.f32 %v419_v7 }
 0x2e5   :  { %v804_v9 = vpop.eup %803 }
 0x2e6   :  { %v421_v10 = vmul.f32 %v804_v9, %v323_v8 }
 0x2e8   :  { %v428_v12 = vrot.slane %v421_v10, %v1321_v14  ;;  %v422_v13 = vmul.f32 %v421_v10, %v407_v2 }
 0x2ea   :  { %v423_v15 = vsub.f32 %v324_v11, %v422_v13  ;;  %v430_v16 = vmul.f32 %v428_v12, %v398_v51 }
 0x2ec   :  { %v435_v17 = vrot.slane %v423_v15, %v1321_v14 }
 0x2ee   :  { %v437_v18 = vadd.f32 %v435_v17, %v430_v16 }
 0x2f0   :  { %v438_v19 = vmax.f32 %v437_v18, 0.0 }
 0x2f2   :  { %710 = vmatmul.mubr.f32.vlgmr.msra.gmra.mrb[2].mxu0 %v438_v19 }
 0x3c5   :  { %v528_v21 = vpop.f32.mrb[2].mxu0 }
 0x3c6   :  { %v529_v22 = vadd.f32 %v555_v20, %v528_v21  ;;  %v711_v23 = vpop.f32.mrb[3].mxu0 }
 0x3c8   :  { %532 = vst [vmem:[#allocation20] sm:$0xff] %v529_v22 }
 0x3c9   :  { %1058 = shalt.err (!%p1055_p8)
}
 0x3ca   :  { %s1059_s18 = scalar_lea.hbm %s1357_s11, 128 }
 0x3cb   :  { %p1060_p9 = scmp.ne.s32.totalorder %s1357_s11, %s1059_s18  ;;  %p1063_p10 = scmp.lt.u32.totalorder %s1059_s18, %s1357_s11 }
 0x3cd   :  { %p1065_p11 = pnand %p1063_p10, %p1060_p9 }
 0x3cf   :  { %1068 = shalt.err (!%p1065_p11)
}
 0x3d0   :  { %542 = dma.vmem_to_hbm [thread:$0]  %s540_s7, 128, %s1357_s11, [#allocation4]  }
 0x3d1   :  { %1081 = dma.done.wait [#allocation4], 128  }
 0x3d2   :  { %1082 = vsyncadd [#allocation4], 4294967168 }
 0x3d3   :  { %546 = vsyncpa [#allocation3], 1 }
 0x3d4   :  { %547 = vsyncpa [#allocation6], 1 }
 0x3d5   :  { %548 = vsyncpa [#allocation9], 1 }
 0x3d6   :  { %549 = vsyncpa [#allocation12], 1 }
 0x3d7   :  { %550 = vsyncpa [#allocation15], 1 }
 0x3d8   :  { %551 = vsyncpa [#allocation18], 1 }
 0x3d9   :  { %552 = vsyncpa [#allocation4], 1 }

</bundles_post_ra>
